<compile_context>
chip_gen: v7x
topology: tpu7x:2x2x1
jax: 0.10.0
libtpu: 0.0.40
codegen_flags: <defaults>
</compile_context>

<pallas_src>
import functools

import jax
import jax.numpy as jnp
from jax.experimental import pallas as pl
from jax.experimental.pallas import tpu as pltpu


# ---------------------------------------------------------------------------
# Single-step kernel
# ---------------------------------------------------------------------------
def _rnn_cell_kernel(x_ref, h_ref, w_ih_ref, b_ih_ref, w_ho_ref, b_ho_ref,
                     out_ref, new_h_ref, *, input_size):
    I = input_size
    # concat([x, h]) @ W_ih  ==  x @ W_ih[:I] + h @ W_ih[I:]
    pre = (
        jnp.dot(x_ref[...], w_ih_ref[:I, :], preferred_element_type=jnp.float32)
        + jnp.dot(h_ref[...], w_ih_ref[I:, :], preferred_element_type=jnp.float32)
        + b_ih_ref[...]
    )
    new_h = jnp.tanh(pre)
    new_h_ref[...] = new_h.astype(new_h_ref.dtype)
    out = (
        jnp.dot(new_h, w_ho_ref[...], preferred_element_type=jnp.float32)
        + b_ho_ref[...]
    )
    out_ref[...] = out.astype(out_ref.dtype)


def rnn_cell_forward(x, hidden, w_ih, b_ih, w_ho, b_ho):
    """One RNN-cell step with pre-packed weights.

    w_ih = i2h_weight.T -> (I+H, H)  (rows [0:I] multiply x, rows [I:] multiply h,
                                      i.e. exactly the concat([x, h]) ordering)
    b_ih -> (1, H),  w_ho = h2o_weight.T -> (H, O),  b_ho -> (1, O)
    Returns (output, new_hidden); new_hidden aliases the `hidden` HBM buffer.
    """
    B, I = x.shape
    H = hidden.shape[1]
    O = w_ho.shape[1]
    full = lambda shape: pl.BlockSpec(shape, lambda: tuple(0 for _ in shape))
    return pl.pallas_call(
        functools.partial(_rnn_cell_kernel, input_size=I),
        out_shape=(
            jax.ShapeDtypeStruct((B, O), x.dtype),
            jax.ShapeDtypeStruct((B, H), x.dtype),
        ),
        in_specs=[
            full((B, I)),       # x
            full((B, H)),       # hidden
            full((I + H, H)),   # packed W_ih (transposed)
            full((1, H)),       # b_ih
            full((H, O)),       # W_ho (transposed)
            full((1, O)),       # b_ho
        ],
        out_specs=(full((B, O)), full((B, H))),
        input_output_aliases={1: 1},   # hidden buffer reused for new_hidden
    )(x, hidden, w_ih, b_ih, w_ho, b_ho)


# One dispatch per step; donate hidden so the alias is a true in-place update.
_rnn_cell_step = jax.jit(rnn_cell_forward, donate_argnums=(1,))


# ---------------------------------------------------------------------------
# Fused multi-step kernel: T timesteps in a single pallas_call.
# Hidden state lives in the VMEM-resident final-hidden output block (constant
# index_map) and is carried across grid iterations; CHUNK timesteps are
# processed per grid iteration to amortize per-step pipeline overhead.
# ---------------------------------------------------------------------------
def _rnn_seq_kernel(xs_ref, h0_ref, w_ih_ref, b_ih_ref, w_ho_ref, b_ho_ref,
                    outs_ref, h_ref, *, input_size, chunk):
    I = input_size

    @pl.when(pl.program_id(0) == 0)
    def _():
        h_ref[...] = h0_ref[...]

    # Hoisted reads: weights / biases stay in vregs for the whole chunk.
    w_x = w_ih_ref[:I, :]
    w_h = w_ih_ref[I:, :]
    b_ih = b_ih_ref[...]
    w_ho = w_ho_ref[...]
    b_ho = b_ho_ref[...]

    h = h_ref[...].astype(jnp.float32)
    for c in range(chunk):  # static unrolled loop over the time chunk
        pre = (
            jnp.dot(xs_ref[c], w_x, preferred_element_type=jnp.float32)
            + jnp.dot(h, w_h, preferred_element_type=jnp.float32)
            + b_ih
        )
        h = jnp.tanh(pre)
        outs_ref[c] = (
            jnp.dot(h, w_ho, preferred_element_type=jnp.float32) + b_ho
        ).astype(outs_ref.dtype)
    h_ref[...] = h.astype(h_ref.dtype)


def _pick_chunk(T, cap=8):
    """Largest divisor of T that is <= cap (>=1)."""
    for c in range(min(T, cap), 0, -1):
        if T % c == 0:
            return c
    return 1


def rnn_sequence_forward(xs, hidden, w_ih, b_ih, w_ho, b_ho):
    """Run T RNN-cell steps in ONE pallas_call.  xs: (T, B, I).
    Returns (outputs (T, B, O), final_hidden (B, H)); final_hidden aliases
    the `hidden` HBM buffer."""
    T, B, I = xs.shape
    H = hidden.shape[1]
    O = w_ho.shape[1]
    chunk = _pick_chunk(T)
    const = lambda shape: pl.BlockSpec(shape, lambda t: (0,) * len(shape))
    return pl.pallas_call(
        functools.partial(_rnn_seq_kernel, input_size=I, chunk=chunk),
        grid=(T // chunk,),
        out_shape=(
            jax.ShapeDtypeStruct((T, B, O), xs.dtype),
            jax.ShapeDtypeStruct((B, H), xs.dtype),
        ),
        in_specs=[
            pl.BlockSpec((chunk, B, I), lambda t: (t, 0, 0)),  # x chunk streamed
            const((B, H)),        # h0
            const((I + H, H)),    # packed W_ih (VMEM-resident for whole call)
            const((1, H)),
            const((H, O)),
            const((1, O)),
        ],
        out_specs=(
            pl.BlockSpec((chunk, B, O), lambda t: (t, 0, 0)),  # per-chunk outputs
            const((B, H)),        # carried hidden / final state (VMEM resident)
        ),
        input_output_aliases={1: 1},   # h0 buffer reused for final hidden
        compiler_params=pltpu.CompilerParams(
            # recurrence over time -> sequential grid axis
            dimension_semantics=("arbitrary",)),
    )(xs, hidden, w_ih, b_ih, w_ho, b_ho)


_rnn_sequence = jax.jit(rnn_sequence_forward, donate_argnums=(1,))


# ---------------------------------------------------------------------------
# Model
# ---------------------------------------------------------------------------
class ModelNew:
    """JAX mirror of the PyTorch ModelNew (deterministic synthetic params)."""

    def __init__(self, input_size, hidden_size, output_size, batch_size, key):
        self.input_size = input_size
        self.hidden_size = hidden_size
        self.output_size = output_size
        k_h, k_w1, k_b1, k_w2, k_b2 = jax.random.split(key, 5)
        # hidden state ~ torch.randn
        self.hidden = jax.random.normal(
            k_h, (batch_size, hidden_size), dtype=jnp.float32)
        # nn.Linear-style init: U(-1/sqrt(fan_in), 1/sqrt(fan_in))
        fan1 = input_size + hidden_size
        lim1 = 1.0 / (fan1 ** 0.5)
        self.i2h_weight = jax.random.uniform(
            k_w1, (hidden_size, fan1), minval=-lim1, maxval=lim1, dtype=jnp.float32)
        self.i2h_bias = jax.random.uniform(
            k_b1, (hidden_size,), minval=-lim1, maxval=lim1, dtype=jnp.float32)
        lim2 = 1.0 / (hidden_size ** 0.5)
        self.h2o_weight = jax.random.uniform(
            k_w2, (output_size, hidden_size), minval=-lim2, maxval=lim2,
            dtype=jnp.float32)
        self.h2o_bias = jax.random.uniform(
            k_b2, (output_size,), minval=-lim2, maxval=lim2, dtype=jnp.float32)

        # ---- hoisted, one-time weight packing (done once, not per step) ----
        # Invariant: w_ih rows [0:input_size] multiply x, rows [input_size:]
        # multiply h — exactly PyTorch's concat([x, h], dim=1) ordering.
        self.w_ih = self.i2h_weight.T                         # (I + H, H)
        self.b_ih = self.i2h_bias.reshape(1, hidden_size)     # (1, H)
        self.w_ho = self.h2o_weight.T                         # (H, O)
        self.b_ho = self.h2o_bias.reshape(1, output_size)     # (1, O)

    def forward(self, x):
        output, new_hidden = _rnn_cell_step(
            x, self.hidden, self.w_ih, self.b_ih, self.w_ho, self.b_ho)
        self.hidden = new_hidden
        return output

    def forward_sequence(self, xs):
        """Fused path for stepping the cell over a whole sequence (T, B, I)."""
        outputs, new_hidden = _rnn_sequence(
            xs, self.hidden, self.w_ih, self.b_ih, self.w_ho, self.b_ho)
        self.hidden = new_hidden
        return outputs


if __name__ == "__main__":
    batch_size = 2
    input_size = 8
    hidden_size = 32
    output_size = 16
    seq_len = 8

    key = jax.random.PRNGKey(0)
    k_model, k_x, k_xs = jax.random.split(key, 3)

    model = ModelNew(input_size, hidden_size, output_size, batch_size, k_model)

    # Host copy of the initial state (device buffer gets donated by forward()).
    h0 = jnp.asarray(jax.device_get(model.hidden))
    w1, b1 = model.i2h_weight, model.i2h_bias
    w2, b2 = model.h2o_weight, model.h2o_bias

    dot = functools.partial(jnp.dot, precision=jax.lax.Precision.HIGHEST)

    def ref_step(x, h):
        new_h = jnp.tanh(dot(jnp.concatenate([x, h], axis=1), w1.T) + b1)
        return dot(new_h, w2.T) + b2, new_h

    # ---- single-step path ----
    x = jax.random.normal(k_x, (batch_size, input_size), dtype=jnp.float32)
    out = jax.block_until_ready(model.forward(x))
    out_ref, h1_ref = ref_step(x, h0)
    assert jnp.allclose(out, out_ref, atol=1e-5, rtol=1e-5), "step output mismatch"
    assert jnp.allclose(model.hidden, h1_ref, atol=1e-5, rtol=1e-5), "hidden mismatch"

    # ---- fused multi-step path ----
    xs = jax.random.normal(k_xs, (seq_len, batch_size, input_size), dtype=jnp.float32)
    h_before = jnp.asarray(jax.device_get(model.hidden))
    outs = jax.block_until_ready(model.forward_sequence(xs))
    h = h_before
    outs_ref = []
    for t in range(seq_len):
        o, h = ref_step(xs[t], h)
        outs_ref.append(o)
    outs_ref = jnp.stack(outs_ref)
    assert jnp.allclose(outs, outs_ref, atol=1e-4, rtol=1e-4), "sequence output mismatch"
    assert jnp.allclose(model.hidden, h, atol=1e-4, rtol=1e-4), "sequence hidden mismatch"

    print("KERNEL_OK")
</pallas_src>

<mosaic_0001>
module attributes {stable_mosaic.version = 11 : i64} {
  func.func @_rnn_cell_kernel(%arg0: memref<2x8xf32, #tpu.memory_space<vmem>>, %arg1: memref<2x32xf32, #tpu.memory_space<vmem>>, %arg2: memref<40x32xf32, #tpu.memory_space<vmem>>, %arg3: memref<1x32xf32, #tpu.memory_space<vmem>>, %arg4: memref<32x16xf32, #tpu.memory_space<vmem>>, %arg5: memref<1x16xf32, #tpu.memory_space<vmem>>, %arg6: memref<2x16xf32, #tpu.memory_space<vmem>>, %arg7: memref<2x32xf32, #tpu.memory_space<vmem>>) attributes {dimension_semantics = [], scalar_prefetch = 0 : i64, scratch_operands = 0 : i64, tpu.core_type = #tpu.core_type<tc>} {
    %c0 = arith.constant 0 : index
    %c0_0 = arith.constant 0 : index
    %0 = vector.load %arg0[%c0, %c0_0] : memref<2x8xf32, #tpu.memory_space<vmem>>, vector<2x8xf32>
    %c0_1 = arith.constant 0 : index
    %c0_2 = arith.constant 0 : index
    %1 = vector.load %arg2[%c0_1, %c0_2] : memref<40x32xf32, #tpu.memory_space<vmem>>, vector<8x32xf32>
    %cst = arith.constant dense<0.000000e+00> : vector<2x32xf32>
    %2 = tpu.matmul %0, %1, %cst {dimension_numbers = #tpu.dot_dimension_numbers<[1], [0], [0], [1], [0, 0, 1, 1], [], []>} : vector<2x8xf32>, vector<8x32xf32>, vector<2x32xf32> -> vector<2x32xf32>
    %c0_3 = arith.constant 0 : index
    %c0_4 = arith.constant 0 : index
    %3 = vector.load %arg1[%c0_3, %c0_4] : memref<2x32xf32, #tpu.memory_space<vmem>>, vector<2x32xf32>
    %c8 = arith.constant 8 : index
    %c0_5 = arith.constant 0 : index
    %4 = vector.load %arg2[%c8, %c0_5] : memref<40x32xf32, #tpu.memory_space<vmem>>, vector<32x32xf32>
    %cst_6 = arith.constant dense<0.000000e+00> : vector<2x32xf32>
    %5 = tpu.matmul %3, %4, %cst_6 {dimension_numbers = #tpu.dot_dimension_numbers<[1], [0], [0], [1], [0, 0, 1, 1], [], []>} : vector<2x32xf32>, vector<32x32xf32>, vector<2x32xf32> -> vector<2x32xf32>
    %6 = arith.addf %2, %5 : vector<2x32xf32>
    %c0_7 = arith.constant 0 : index
    %c0_8 = arith.constant 0 : index
    %7 = vector.load %arg3[%c0_7, %c0_8] : memref<1x32xf32, #tpu.memory_space<vmem>>, vector<1x32xf32>
    %8 = vector.broadcast %7 : vector<1x32xf32> to vector<2x32xf32>
    %9 = arith.addf %6, %8 : vector<2x32xf32>
    %10 = math.tanh %9 : vector<2x32xf32>
    %c0_9 = arith.constant 0 : index
    %c0_10 = arith.constant 0 : index
    %11 = vector.load %arg7[%c0_9, %c0_10] : memref<2x32xf32, #tpu.memory_space<vmem>>, vector<2x32xf32>
    tpu.vector_store %arg7[%c0_9, %c0_10], %10 {strides = array<i32>} : memref<2x32xf32, #tpu.memory_space<vmem>>, vector<2x32xf32>,
    %c0_11 = arith.constant 0 : index
    %c0_12 = arith.constant 0 : index
    %12 = vector.load %arg4[%c0_11, %c0_12] : memref<32x16xf32, #tpu.memory_space<vmem>>, vector<32x16xf32>
    %cst_13 = arith.constant dense<0.000000e+00> : vector<2x16xf32>
    %13 = tpu.matmul %10, %12, %cst_13 {dimension_numbers = #tpu.dot_dimension_numbers<[1], [0], [0], [1], [0, 0, 1, 1], [], []>} : vector<2x32xf32>, vector<32x16xf32>, vector<2x16xf32> -> vector<2x16xf32>
    %c0_14 = arith.constant 0 : index
    %c0_15 = arith.constant 0 : index
    %14 = vector.load %arg5[%c0_14, %c0_15] : memref<1x16xf32, #tpu.memory_space<vmem>>, vector<1x16xf32>
    %15 = vector.broadcast %14 : vector<1x16xf32> to vector<2x16xf32>
    %16 = arith.addf %13, %15 : vector<2x16xf32>
    %c0_16 = arith.constant 0 : index
    %c0_17 = arith.constant 0 : index
    %17 = vector.load %arg6[%c0_16, %c0_17] : memref<2x16xf32, #tpu.memory_space<vmem>>, vector<2x16xf32>
    tpu.vector_store %arg6[%c0_16, %c0_17], %16 {strides = array<i32>} : memref<2x16xf32, #tpu.memory_space<vmem>>, vector<2x16xf32>,
    return
  }
}

</mosaic_0001>

<bundles_post_ra>
// kernel: rnn_cell_forward.1
= control target key start
LH: loop header
LB: loop body
LE: loop exit
PB: predicated region body
PF: predicated region fallthrough
CT: control target
= control target key end

     0   :  { %13 = vsyncpa [#allocation3], 0  ;;  %s579_s0 = inlined_call_operand.vmem [shape: f32[2,8], index: 0, kind: input, shape index: {}]   ;;  %s580_s1 = inlined_call_operand.hbm [shape: f32[2,32], index: 1, kind: input, shape index: {}, may-alias: {1,7}]   ;;  %s581_s2 = inlined_call_operand.vmem [shape: f32[40,32], index: 2, kind: input, shape index: {}]   ;;  %s582_s3 = inlined_call_operand.vmem [shape: f32[1,32], index: 3, kind: input, shape index: {}]   ;;  %s583_s4 = inlined_call_operand.vmem [shape: f32[32,16], index: 4, kind: input, shape index: {}]   ;;  %s584_s5 = inlined_call_operand.vmem [shape: f32[1,16], index: 5, kind: input, shape index: {}]   ;;  %s585_s6 = inlined_call_operand.hbm [shape: f32[2,16], index: 6, kind: output, shape index: {0}]   ;;  %s586_s7 = inlined_call_operand.hbm [shape: f32[2,32], index: 7, kind: output, shape index: {1}, may-alias: {1,7}]  }
   0x1   :  { %14 = vsyncpa [#allocation4], 0 }
   0x2   :  { %15 = vsyncpa [#allocation7], 0  ;;  %s456_s24 = smov [#allocation2]   ;;  %s384_s28 = scalar_lea.hbm %s580_s1, 32 }
   0x3   :  { %s24_s25 = sshll.u32 %s456_s24, 4  ;;  %p385_p0 = scmp.ne.s32.totalorder %s580_s1, %s384_s28  ;;  %s25_s25 = int_to_ptr.vmem [resolvable:$true] %s24_s25 }
   0x4   :  { %p388_p1 = scmp.lt.u32.totalorder %s384_s28, %s580_s1 }
   0x6   :  { %p390_p2 = pnand %p388_p1, %p385_p0 }
   0x8   :  { %393 = shalt.err (!%p390_p2)
}
   0x9   :  { %s394_s10 = scalar_lea.vmem %s25_s25, 32  ;;  %p399_p4 = scmp.lt.s32.totalorder %s25_s25, %s25_s25 }
   0xa   :  { %p395_p3 = scmp.ne.s32.totalorder %s25_s25, %s394_s10  ;;  %p400_p5 = scmp.lt.s32.totalorder %s394_s10, %s394_s10 }
   0xc   :  { %p401_p6 = por %p400_p5, %p399_p4 }
   0xe   :  { %p402_p7 = pnand %p401_p6, %p395_p3 }
  0x10   :  { %405 = shalt.err (!%p402_p7)
}
  0x11   :  { %27 = dma.hbm_to_vmem [thread:$0]  %s580_s1, 32, %s25_s25, [#allocation3]  }
  0x12   :  { %450 = dma.done.wait [#allocation3], 32  }
  0x13   :  { %451 = vsyncadd [#allocation3], 4294967264  ;;  %v457_v0 = vmov 0.0|0.0   ;;  %v458_v1 = vmov 0.0   ;;  %vm459_vm0 = vmmov 0   ;;  %v42_v2 = vld [vmem:[%s581_s2 + $0x8] sm:$0xff] }
  0x14   :  { %364 = vmatprep.subr.bf16.mxu0 %v457_v0  ;;  %348 = vmatprep.subr.mxu1 %v458_v1  ;;  %v43_v3 = vld [vmem:[%s581_s2 + $0x10] sm:$0xff]  ;;  %v44_v4 = vld [vmem:[%s581_s2 + $0x18] sm:$0xff]  ;;  %vm120_vm1 = vcmask 64512   ;;  %v45_v6 = vld [vmem:[%s581_s2 + $0x20] sm:$0xff]  ;;  %vm46_vm2 = vcmask 261120   ;;  %vm203_vm3 = vcmask 254976  }
  0x15   :  { %350 = vmatprep.mubr.msk.f32.mxu1 %vm459_vm0, %v458_v1  ;;  %345 = vmatprep.mubr.msk.f32.mxu0 %vm459_vm0, %v458_v1  ;;  %v365_v5 = vpack.c.bf16 %v43_v3, %v42_v2  ;;  %v40_v7 = vld [vmem:[%s581_s2] sm:$0xff]  ;;  %v368_v9 = vpack.c.bf16 %v45_v6, %v44_v4  ;;  %v206_v12 = vld [vmem:[%s583_s4 + $0x8] sm:$0xff]  ;;  %v207_v13 = vld [vmem:[%s583_s4 + $0x10] sm:$0xff] }
  0x16   :  { %v39_v8 = vld [vmem:[%s579_s0] sm:$0x3]  ;;  %349 = vmatpush3.msra.mxu1 %v40_v7  ;;  %v208_v15 = vld [vmem:[%s583_s4 + $0x18] sm:$0xff] }
  0x17   :  { %366 = vmatpush3.bf16.msra.mxu0 %v365_v5  ;;  %351 = vmatmul.mubr.msk.f32.vlgmr.msra.gmra.mrb[0].mxu1 %vm120_vm1, %v39_v8  ;;  %v41_v10 = vld [vmem:[#allocation2] sm:$0x3]  ;;  %v374_v16 = vpack.c.bf16 %v208_v15, %v207_v13 }
  0x18   :  { %367 = vmatprep.subr.bf16.mxu0 %v457_v0  ;;  %370 = vmatprep.subr.bf16.mxu1 %v457_v0  ;;  %v205_v11 = vld [vmem:[%s583_s4] sm:$0xff]  ;;  %s460_s4 = smov [#allocation6]  }
  0x19   :  { %361 = vmatprep.mubr.msk.f32.mxu1 %vm459_vm0, %v458_v1  ;;  %v371_v14 = vpack.c.bf16 %v206_v12, %v205_v11  ;;  %v322_v20 = vld [vmem:[%s582_s3] ss:$0 sm:$0xff]  ;;  %s307_s9 = sshll.u32 %s460_s4, 4  ;;  %s308_s9 = int_to_ptr.vmem [resolvable:$true] %s307_s9 }
  0x1a   :  { %s406_s10 = scalar_lea.vmem %s308_s9, 32  ;;  %p411_p9 = scmp.lt.s32.totalorder %s308_s9, %s308_s9 }
  0x1b   :  { %369 = vmatpush3.bf16.msra.mxu0 %v368_v9  ;;  %372 = vmatpush3.bf16.msra.mxu1 %v371_v14  ;;  %p407_p8 = scmp.ne.s32.totalorder %s308_s9, %s406_s10  ;;  %p412_p10 = scmp.lt.s32.totalorder %s406_s10, %s406_s10 }
  0x1c   :  { %373 = vmatprep.subr.bf16.mxu1 %v457_v0 }
  0x1d   :  { %p413_p11 = por %p412_p10, %p411_p9 }
  0x1e   :  { %346 = vmatmul.mubr.msk.f32.vlgmr.msra.gmra.mrb[0].mxu0 %vm46_vm2, %v41_v10 }
  0x1f   :  { %375 = vmatpush3.bf16.msra.mxu1 %v374_v16  ;;  %p414_p12 = pnand %p413_p11, %p407_p8 }
  0xea   :  { %v190_v17 = vpop.f32.mrb[0].mxu1 }
  0xeb   :  { %v352_v18 = vpop.f32.mrb[1].mxu1 }
  0xf1   :  { %v116_v19 = vpop.f32.mrb[0].mxu0 }
  0xf2   :  { %v191_v21 = vadd.f32 %v190_v17, %v116_v19  ;;  %v347_v22 = vpop.f32.mrb[1].mxu0 }
  0xf4   :  { %v201_v23 = vadd.f32 %v322_v20, %v191_v21 }
  0xf6   :  { %382 = vtanh.f32 %v201_v23 }
 0x100   :  { %v383_v24 = vpop.eup %382 }
 0x101   :  { %362 = vmatmul.mubr.msk.f32.vlgmr.msra.gmra.mrb[2].mxu1 %vm46_vm2, %v383_v24  ;;  %204 = vst.msk [vmem:[#allocation6] sm:$0x3] %vm203_vm3, %v383_v24 }
 0x102   :  { %417 = shalt.err (!%p414_p12)
}
 0x103   :  { %s418_s12 = scalar_lea.hbm %s586_s7, 32 }
 0x104   :  { %p419_p13 = scmp.ne.s32.totalorder %s586_s7, %s418_s12  ;;  %p422_p0 = scmp.lt.u32.totalorder %s418_s12, %s586_s7 }
 0x106   :  { %p424_p1 = pnand %p422_p0, %p419_p13 }
 0x108   :  { %427 = shalt.err (!%p424_p1)
}
 0x109   :  { %310 = dma.vmem_to_hbm [thread:$0]  %s308_s9, 32, %s586_s7, [#allocation7]   ;;  %v323_v25 = vld [vmem:[%s584_s5] ss:$0 sm:$0xff]  ;;  %vm289_vm4 = vcmask 123904  }
 0x10a   :  { %s461_s20 = smov [#allocation5]  }
 0x10b   :  { %s297_s21 = sshll.u32 %s461_s20, 4  ;;  %s298_s21 = int_to_ptr.vmem [resolvable:$true] %s297_s21 }
 0x10c   :  { %s428_s22 = scalar_lea.vmem %s298_s21, 32  ;;  %p433_p3 = scmp.lt.s32.totalorder %s298_s21, %s298_s21 }
 0x10d   :  { %p429_p2 = scmp.ne.s32.totalorder %s298_s21, %s428_s22  ;;  %p434_p4 = scmp.lt.s32.totalorder %s428_s22, %s428_s22 }
 0x10f   :  { %p435_p5 = por %p434_p4, %p433_p3 }
 0x111   :  { %p436_p6 = pnand %p435_p5, %p429_p2 }
 0x1d4   :  { %v285_v26 = vpop.f32.mrb[2].mxu1 }
 0x1d5   :  { %v286_v27 = vadd.f32 %v323_v25, %v285_v26  ;;  %v363_v28 = vpop.f32.mrb[3].mxu1 }
 0x1d7   :  { %290 = vst.msk [vmem:[#allocation5] sm:$0x3] %vm289_vm4, %v286_v27 }
 0x1d8   :  { %439 = shalt.err (!%p436_p6)
}
 0x1d9   :  { %s440_s24 = scalar_lea.hbm %s585_s6, 32 }
 0x1da   :  { %p441_p7 = scmp.ne.s32.totalorder %s585_s6, %s440_s24  ;;  %p444_p8 = scmp.lt.u32.totalorder %s440_s24, %s585_s6 }
 0x1dc   :  { %p446_p9 = pnand %p444_p8, %p441_p7 }
 0x1de   :  { %449 = shalt.err (!%p446_p9)
}
 0x1df   :  { %300 = dma.vmem_to_hbm [thread:$0]  %s298_s21, 32, %s585_s6, [#allocation4]  }
 0x1e0   :  { %452 = dma.done.wait [#allocation4], 32  }
 0x1e1   :  { %453 = vsyncadd [#allocation4], 4294967264 }
 0x1e2   :  { %454 = dma.done.wait [#allocation7], 32  }
 0x1e3   :  { %455 = vsyncadd [#allocation7], 4294967264 }
 0x1e4   :  { %317 = vsyncpa [#allocation3], 1 }
 0x1e5   :  { %318 = vsyncpa [#allocation4], 1 }
 0x1e6   :  { %319 = vsyncpa [#allocation7], 1 }

</bundles_post_ra>
